<compile_context>
chip_gen: v7x
topology: tpu7x:2x2x1
jax: 0.10.0
libtpu: 0.0.40
codegen_flags: <defaults>
</compile_context>

<pallas_src>
import functools

import numpy as np
import jax
import jax.numpy as jnp
from jax.experimental import pallas as pl
from jax.experimental.pallas import tpu as pltpu

BN_EPS = 1e-5
LRELU_SLOPE = 0.2
LANE = 128

# rows inside the packed bias/gamma/beta slab (8-sublane aligned bands)
_BIAS_ROW, _GAMMA_ROW, _BETA_ROW = 0, 8, 16
_VSLAB_ROWS = 24


def _rup(n, m=LANE):
    return ((n + m - 1) // m) * m


# ---------------------------------------------------------------------------
# Kernel: whole forward pass. 4 inputs (x, eps, weight slab, vector slab),
# 2 lane-dense outputs. All matmuls run bf16 x bf16 -> f32 on the MXU.
# Block ids: 0 enc1, 1 enc2, 2 fc_mu|fc_var, 3 dec1|clf1, 4 dec2, 5 dec3,
#            6 clf2, 7 clf3.
# ---------------------------------------------------------------------------
def dual_vae_kernel(x_ref, eps_ref, w_ref, v_ref, xrec_ref, small_ref,
                    *, offs, widths, k_dims, small_w):
    f32, bf16 = jnp.float32, jnp.bfloat16

    def linear(h, blk):
        o, w, k = offs[blk], widths[blk], k_dims[blk]
        wt = w_ref[0:k, o:o + w].astype(bf16)          # zero-padded weight block
        b = v_ref[_BIAS_ROW:_BIAS_ROW + 1, o:o + w]     # (1, w) f32 bias
        return jnp.dot(h.astype(bf16), wt, preferred_element_type=f32) + b

    def bn_lrelu(y, blk):
        # BatchNorm1d training semantics (batch mean, biased var) + LeakyReLU(0.2).
        o, w = offs[blk], widths[blk]
        gamma = v_ref[_GAMMA_ROW:_GAMMA_ROW + 1, o:o + w]
        beta = v_ref[_BETA_ROW:_BETA_ROW + 1, o:o + w]
        mean = jnp.mean(y, axis=0, keepdims=True)
        cen = y - mean                                  # hoisted; reused for var + normalize
        var = jnp.mean(cen * cen, axis=0, keepdims=True)
        out = cen * jax.lax.rsqrt(var + BN_EPS) * gamma + beta
        return jnp.where(out > 0, out, LRELU_SLOPE * out)

    # ----- encoder -----
    h = bn_lrelu(linear(x_ref[...], 0), 0)              # (B, 128)
    h = bn_lrelu(linear(h, 1), 1)                       # (B, 128), data in 0:64

    # ----- fused fc_mu | fc_var (single MXU issue) -----
    # block-2 columns: [mu(0:L) | log_var(L:2L) | 0 ... | log_var(SW:SW+L) | 0]
    mv = linear(h, 2)                                   # (B, 2*SW)
    mv_lo = mv[:, 0:small_w]                            # [mu | log_var | 0]   (vreg-aligned slice)
    lv_al = mv[:, small_w:2 * small_w]                  # [log_var | 0]        (lane-aligned copy)

    # ----- reparameterize (f32) -----
    # eps is zero-padded past latent_dim and the padded lanes of lv_al are exact
    # zeros, so padded lanes of z stay finite/harmless.
    z = mv_lo + eps_ref[...] * jnp.exp(0.5 * lv_al)     # cols 0:L hold z

    # ----- fused decoder-1 | classifier-1 (single MXU issue + fused per-feature BN) -----
    hdc = bn_lrelu(linear(z, 3), 3)                     # [dec_h(0:64) | clf_h(64:96) | 0]

    # ----- decoder tail -----
    d = bn_lrelu(linear(hdc, 4), 4)                     # (B, 128)
    xrec_ref[...] = linear(d, 5)                        # lane-dense full-width store

    # ----- classifier tail -----
    c = bn_lrelu(linear(hdc, 6), 6)                     # (B, 128), data in 0:64
    logits = linear(c, 7)                               # [0(0:2L) | logits(2L:2L+NC) | 0]

    # single lane-dense store: [mu | log_var | logits | 0]
    small_ref[...] = mv_lo + logits


# ---------------------------------------------------------------------------
# Parameters in natural (PyTorch-like) shapes: W (in, out), b/gamma/beta (out,)
# ---------------------------------------------------------------------------
def init_params(key, input_dim, latent_dim=10, hidden_dims=(128, 64), num_classes=2):
    def linear(k, fi, fo):
        kw, kb = jax.random.split(k)
        lim = 1.0 / float(np.sqrt(fi))
        w = jax.random.uniform(kw, (fi, fo), jnp.float32, -lim, lim)
        b = jax.random.uniform(kb, (fo,), jnp.float32, -lim, lim)
        return w, b

    def bn(dim):  # PyTorch BatchNorm1d default init
        return jnp.ones((dim,), jnp.float32), jnp.zeros((dim,), jnp.float32)

    H0, H1 = hidden_dims
    C0, C1 = H1 // 2, H0 // 2
    ks = iter(jax.random.split(key, 10))
    p = {}
    p["enc1"] = linear(next(ks), input_dim, H0) + bn(H0)
    p["enc2"] = linear(next(ks), H0, H1) + bn(H1)
    p["mu"] = linear(next(ks), H1, latent_dim)
    p["var"] = linear(next(ks), H1, latent_dim)
    p["dec1"] = linear(next(ks), latent_dim, H1) + bn(H1)
    p["dec2"] = linear(next(ks), H1, H0) + bn(H0)
    p["dec3"] = linear(next(ks), H0, input_dim)
    p["clf1"] = linear(next(ks), latent_dim, C0) + bn(C0)
    p["clf2"] = linear(next(ks), C0, C1) + bn(C1)
    p["clf3"] = linear(next(ks), C1, num_classes)
    return p


# ---------------------------------------------------------------------------
# Pack all parameters into two lane-dense slabs + a static layout description.
# ---------------------------------------------------------------------------
def pack_model(params, input_dim, latent_dim, hidden_dims, num_classes):
    H0, H1 = hidden_dims
    C0, C1 = H1 // 2, H0 // 2
    L, NC, IN = latent_dim, num_classes, input_dim

    SW = _rup(2 * L + NC)        # width of the packed [mu | log_var | logits] output
    KP = _rup(IN)                # padded input width
    widths = (_rup(H0), _rup(H1), 2 * SW, _rup(H1 + C0),
              _rup(H0), _rup(IN), _rup(C1), SW)
    offs_all = tuple(int(v) for v in np.concatenate([[0], np.cumsum(widths)]))
    tot = offs_all[-1]
    offs = offs_all[:8]
    # contracting (K) dim of each block = padded width of its input activation
    k_dims = (KP, widths[0], widths[1], SW, widths[3], widths[4], widths[3], widths[6])
    rows = int(max(k_dims))

    w_slab = np.zeros((rows, tot), np.float32)
    v_slab = np.zeros((_VSLAB_ROWS, tot), np.float32)

    def put(blk, w, b, g=None, t=None, row0=0, col0=0):
        o = offs[blk] + col0
        fi, fo = w.shape
        w_slab[row0:row0 + fi, o:o + fo] = np.asarray(w)
        v_slab[_BIAS_ROW, o:o + fo] = np.asarray(b)
        if g is not None:
            v_slab[_GAMMA_ROW, o:o + fo] = np.asarray(g)
            v_slab[_BETA_ROW, o:o + fo] = np.asarray(t)

    put(0, *params["enc1"])                          # x -> H0
    put(1, *params["enc2"])                          # H0 -> H1
    put(2, *params["mu"])                            # cols 0:L
    put(2, *params["var"], col0=L)                   # cols L:2L  (for the packed output)
    put(2, *params["var"], col0=SW)                  # cols SW:SW+L (lane-aligned copy for reparam)
    put(3, *params["dec1"])                          # cols 0:H1
    put(3, *params["clf1"], col0=H1)                 # cols H1:H1+C0
    put(4, *params["dec2"])
    put(5, *params["dec3"])
    put(6, *params["clf2"], row0=H1)                 # rows aligned with clf slot inside hdc
    put(7, *params["clf3"], col0=2 * L)              # logits land right after [mu | log_var]

    layout = dict(offs=offs, widths=widths, k_dims=k_dims, small_w=SW, kp=KP,
                  input_dim=IN, latent_dim=L, num_classes=NC)
    return jnp.asarray(w_slab), jnp.asarray(v_slab), layout


# ---------------------------------------------------------------------------
# Wrapper: one gridless pallas_call; everything resident in VMEM (~0.7 MiB).
# ---------------------------------------------------------------------------
def make_forward(layout):
    offs, widths, k_dims = layout["offs"], layout["widths"], layout["k_dims"]
    SW, KP = layout["small_w"], layout["kp"]
    IN, L, NC = layout["input_dim"], layout["latent_dim"], layout["num_classes"]

    kernel = functools.partial(dual_vae_kernel, offs=offs, widths=widths,
                               k_dims=k_dims, small_w=SW)
    vmem = pl.BlockSpec(memory_space=pltpu.MemorySpace.VMEM)

    @jax.jit
    def forward(x, eps, w_slab, v_slab):
        B = x.shape[0]
        xp = jnp.zeros((B, KP), jnp.float32).at[:, :IN].set(x)
        ep = jnp.zeros((B, SW), jnp.float32).at[:, :L].set(eps)
        xrec_p, small = pl.pallas_call(
            kernel,
            out_shape=(jax.ShapeDtypeStruct((B, widths[5]), jnp.float32),
                       jax.ShapeDtypeStruct((B, SW), jnp.float32)),
            in_specs=[vmem, vmem, vmem, vmem],
            out_specs=(vmem, vmem),
            compiler_params=pltpu.CompilerParams(vmem_limit_bytes=8 << 20),
        )(xp, ep, w_slab, v_slab)
        x_recon = xrec_p[:, :IN]
        class_logits = small[:, 2 * L:2 * L + NC]
        mu = small[:, :L]
        log_var = small[:, L:2 * L]
        return x_recon, class_logits, mu, log_var

    return forward


# ---------------------------------------------------------------------------
# Pure-JAX reference (same math, same bf16-operand matmuls) for a sanity check.
# ---------------------------------------------------------------------------
def reference_forward(x, eps, params):
    bf16, f32 = jnp.bfloat16, jnp.float32

    def lin(h, w, b):
        return jnp.dot(h.astype(bf16), w.astype(bf16), preferred_element_type=f32) + b

    def bn_lrelu(h, g, bt):
        m = jnp.mean(h, axis=0, keepdims=True)
        c = h - m
        v = jnp.mean(c * c, axis=0, keepdims=True)
        y = c * jax.lax.rsqrt(v + BN_EPS) * g + bt
        return jnp.where(y > 0, y, LRELU_SLOPE * y)

    we1, be1, ge1, te1 = params["enc1"]
    we2, be2, ge2, te2 = params["enc2"]
    wmu, bmu = params["mu"]
    wv, bv = params["var"]
    wd1, bd1, gd1, td1 = params["dec1"]
    wd2, bd2, gd2, td2 = params["dec2"]
    wd3, bd3 = params["dec3"]
    wc1, bc1, gc1, tc1 = params["clf1"]
    wc2, bc2, gc2, tc2 = params["clf2"]
    wc3, bc3 = params["clf3"]

    h = bn_lrelu(lin(x, we1, be1), ge1, te1)
    h = bn_lrelu(lin(h, we2, be2), ge2, te2)
    mu = lin(h, wmu, bmu)
    lv = lin(h, wv, bv)
    z = mu + eps * jnp.exp(0.5 * lv)
    d = bn_lrelu(lin(z, wd1, bd1), gd1, td1)
    d = bn_lrelu(lin(d, wd2, bd2), gd2, td2)
    xr = lin(d, wd3, bd3)
    c = bn_lrelu(lin(z, wc1, bc1), gc1, tc1)
    c = bn_lrelu(lin(c, wc2, bc2), gc2, tc2)
    logits = lin(c, wc3, bc3)
    return xr, logits, mu, lv


if __name__ == "__main__":
    B = 8
    INPUT_DIM = 32
    LATENT_DIM = 10
    HIDDEN_DIMS = (128, 64)
    NUM_CLASSES = 2

    key = jax.random.PRNGKey(0)
    k_param, k_x, k_eps = jax.random.split(key, 3)

    params = init_params(k_param, INPUT_DIM, LATENT_DIM, HIDDEN_DIMS, NUM_CLASSES)
    x = jax.random.normal(k_x, (B, INPUT_DIM), jnp.float32)
    eps = jax.random.normal(k_eps, (B, LATENT_DIM), jnp.float32)

    w_slab, v_slab, layout = pack_model(params, INPUT_DIM, LATENT_DIM,
                                        HIDDEN_DIMS, NUM_CLASSES)
    forward = make_forward(layout)

    outs = jax.block_until_ready(forward(x, eps, w_slab, v_slab))
    x_recon, class_logits, mu, log_var = outs

    # sanity-check against the pure-JAX reference (same bf16-operand matmuls)
    refs = reference_forward(x, eps, params)
    for got, want in zip(outs, refs):
        assert got.shape == want.shape and got.dtype == want.dtype
        assert float(jnp.max(jnp.abs(got - want))) < 2e-2

    print("KERNEL_OK")
</pallas_src>

<mosaic_0001>
module attributes {stable_mosaic.version = 11 : i64} {
  func.func @dual_vae_kernel(%arg0: memref<8x128xf32, #tpu.memory_space<vmem>>, %arg1: memref<8x128xf32, #tpu.memory_space<vmem>>, %arg2: memref<128x1152xf32, #tpu.memory_space<vmem>>, %arg3: memref<24x1152xf32, #tpu.memory_space<vmem>>, %arg4: memref<8x128xf32, #tpu.memory_space<vmem>>, %arg5: memref<8x128xf32, #tpu.memory_space<vmem>>) attributes {dimension_semantics = [], scalar_prefetch = 0 : i64, scratch_operands = 0 : i64, tpu.core_type = #tpu.core_type<tc>} {
    %c0 = arith.constant 0 : index
    %c0_0 = arith.constant 0 : index
    %0 = vector.load %arg0[%c0, %c0_0] : memref<8x128xf32, #tpu.memory_space<vmem>>, vector<8x128xf32>
    %c0_1 = arith.constant 0 : index
    %c0_2 = arith.constant 0 : index
    %1 = vector.load %arg2[%c0_1, %c0_2] : memref<128x1152xf32, #tpu.memory_space<vmem>>, vector<128x128xf32>
    %2 = arith.truncf %1 : vector<128x128xf32> to vector<128x128xbf16>
    %c0_3 = arith.constant 0 : index
    %c0_4 = arith.constant 0 : index
    %3 = vector.load %arg3[%c0_3, %c0_4] : memref<24x1152xf32, #tpu.memory_space<vmem>>, vector<1x128xf32>
    %4 = arith.truncf %0 : vector<8x128xf32> to vector<8x128xbf16>
    %cst = arith.constant dense<0.000000e+00> : vector<8x128xf32>
    %5 = tpu.matmul %4, %2, %cst {dimension_numbers = #tpu.dot_dimension_numbers<[1], [0], [0], [1], [0, 0, 1, 1], [], []>} : vector<8x128xbf16>, vector<128x128xbf16>, vector<8x128xf32> -> vector<8x128xf32>
    %6 = vector.broadcast %3 : vector<1x128xf32> to vector<8x128xf32>
    %7 = arith.addf %5, %6 : vector<8x128xf32>
    %c8 = arith.constant 8 : index
    %c0_5 = arith.constant 0 : index
    %8 = vector.load %arg3[%c8, %c0_5] : memref<24x1152xf32, #tpu.memory_space<vmem>>, vector<1x128xf32>
    %c16 = arith.constant 16 : index
    %c0_6 = arith.constant 0 : index
    %9 = vector.load %arg3[%c16, %c0_6] : memref<24x1152xf32, #tpu.memory_space<vmem>>, vector<1x128xf32>
    %cst_7 = arith.constant dense<0.000000e+00> : vector<128xf32>
    %10 = vector.multi_reduction <add>, %7, %cst_7 [0] : vector<8x128xf32> to vector<128xf32>
    %11 = vector.shape_cast %10 : vector<128xf32> to vector<1x128xf32>
    %cst_8 = arith.constant 8.000000e+00 : f32
    %12 = vector.broadcast %cst_8 : f32 to vector<1x128xf32>
    %13 = arith.divf %11, %12 : vector<1x128xf32>
    %14 = vector.broadcast %13 : vector<1x128xf32> to vector<8x128xf32>
    %15 = arith.subf %7, %14 : vector<8x128xf32>
    %16 = arith.mulf %15, %15 : vector<8x128xf32>
    %cst_9 = arith.constant dense<0.000000e+00> : vector<128xf32>
    %17 = vector.multi_reduction <add>, %16, %cst_9 [0] : vector<8x128xf32> to vector<128xf32>
    %18 = vector.shape_cast %17 : vector<128xf32> to vector<1x128xf32>
    %cst_10 = arith.constant 8.000000e+00 : f32
    %19 = vector.broadcast %cst_10 : f32 to vector<1x128xf32>
    %20 = arith.divf %18, %19 : vector<1x128xf32>
    %cst_11 = arith.constant 9.99999974E-6 : f32
    %21 = vector.broadcast %cst_11 : f32 to vector<1x128xf32>
    %22 = arith.addf %20, %21 : vector<1x128xf32>
    %23 = math.rsqrt %22 : vector<1x128xf32>
    %24 = vector.broadcast %23 : vector<1x128xf32> to vector<8x128xf32>
    %25 = arith.mulf %15, %24 : vector<8x128xf32>
    %26 = vector.broadcast %8 : vector<1x128xf32> to vector<8x128xf32>
    %27 = arith.mulf %25, %26 : vector<8x128xf32>
    %28 = vector.broadcast %9 : vector<1x128xf32> to vector<8x128xf32>
    %29 = arith.addf %27, %28 : vector<8x128xf32>
    %cst_12 = arith.constant 0.000000e+00 : f32
    %30 = vector.broadcast %cst_12 : f32 to vector<8x128xf32>
    %31 = arith.cmpf ogt, %29, %30 : vector<8x128xf32>
    %cst_13 = arith.constant 2.000000e-01 : f32
    %32 = vector.broadcast %cst_13 : f32 to vector<8x128xf32>
    %33 = arith.mulf %32, %29 : vector<8x128xf32>
    %34 = arith.select %31, %29, %33 : vector<8x128xi1>, vector<8x128xf32>
    %c0_14 = arith.constant 0 : index
    %c128 = arith.constant 128 : index
    %35 = vector.load %arg2[%c0_14, %c128] : memref<128x1152xf32, #tpu.memory_space<vmem>>, vector<128x128xf32>
    %36 = arith.truncf %35 : vector<128x128xf32> to vector<128x128xbf16>
    %c0_15 = arith.constant 0 : index
    %c128_16 = arith.constant 128 : index
    %37 = vector.load %arg3[%c0_15, %c128_16] : memref<24x1152xf32, #tpu.memory_space<vmem>>, vector<1x128xf32>
    %38 = arith.truncf %34 : vector<8x128xf32> to vector<8x128xbf16>
    %cst_17 = arith.constant dense<0.000000e+00> : vector<8x128xf32>
    %39 = tpu.matmul %38, %36, %cst_17 {dimension_numbers = #tpu.dot_dimension_numbers<[1], [0], [0], [1], [0, 0, 1, 1], [], []>} : vector<8x128xbf16>, vector<128x128xbf16>, vector<8x128xf32> -> vector<8x128xf32>
    %40 = vector.broadcast %37 : vector<1x128xf32> to vector<8x128xf32>
    %41 = arith.addf %39, %40 : vector<8x128xf32>
    %c8_18 = arith.constant 8 : index
    %c128_19 = arith.constant 128 : index
    %42 = vector.load %arg3[%c8_18, %c128_19] : memref<24x1152xf32, #tpu.memory_space<vmem>>, vector<1x128xf32>
    %c16_20 = arith.constant 16 : index
    %c128_21 = arith.constant 128 : index
    %43 = vector.load %arg3[%c16_20, %c128_21] : memref<24x1152xf32, #tpu.memory_space<vmem>>, vector<1x128xf32>
    %cst_22 = arith.constant dense<0.000000e+00> : vector<128xf32>
    %44 = vector.multi_reduction <add>, %41, %cst_22 [0] : vector<8x128xf32> to vector<128xf32>
    %45 = vector.shape_cast %44 : vector<128xf32> to vector<1x128xf32>
    %cst_23 = arith.constant 8.000000e+00 : f32
    %46 = vector.broadcast %cst_23 : f32 to vector<1x128xf32>
    %47 = arith.divf %45, %46 : vector<1x128xf32>
    %48 = vector.broadcast %47 : vector<1x128xf32> to vector<8x128xf32>
    %49 = arith.subf %41, %48 : vector<8x128xf32>
    %50 = arith.mulf %49, %49 : vector<8x128xf32>
    %cst_24 = arith.constant dense<0.000000e+00> : vector<128xf32>
    %51 = vector.multi_reduction <add>, %50, %cst_24 [0] : vector<8x128xf32> to vector<128xf32>
    %52 = vector.shape_cast %51 : vector<128xf32> to vector<1x128xf32>
    %cst_25 = arith.constant 8.000000e+00 : f32
    %53 = vector.broadcast %cst_25 : f32 to vector<1x128xf32>
    %54 = arith.divf %52, %53 : vector<1x128xf32>
    %cst_26 = arith.constant 9.99999974E-6 : f32
    %55 = vector.broadcast %cst_26 : f32 to vector<1x128xf32>
    %56 = arith.addf %54, %55 : vector<1x128xf32>
    %57 = math.rsqrt %56 : vector<1x128xf32>
    %58 = vector.broadcast %57 : vector<1x128xf32> to vector<8x128xf32>
    %59 = arith.mulf %49, %58 : vector<8x128xf32>
    %60 = vector.broadcast %42 : vector<1x128xf32> to vector<8x128xf32>
    %61 = arith.mulf %59, %60 : vector<8x128xf32>
    %62 = vector.broadcast %43 : vector<1x128xf32> to vector<8x128xf32>
    %63 = arith.addf %61, %62 : vector<8x128xf32>
    %cst_27 = arith.constant 0.000000e+00 : f32
    %64 = vector.broadcast %cst_27 : f32 to vector<8x128xf32>
    %65 = arith.cmpf ogt, %63, %64 : vector<8x128xf32>
    %cst_28 = arith.constant 2.000000e-01 : f32
    %66 = vector.broadcast %cst_28 : f32 to vector<8x128xf32>
    %67 = arith.mulf %66, %63 : vector<8x128xf32>
    %68 = arith.select %65, %63, %67 : vector<8x128xi1>, vector<8x128xf32>
    %c0_29 = arith.constant 0 : index
    %c256 = arith.constant 256 : index
    %69 = vector.load %arg2[%c0_29, %c256] : memref<128x1152xf32, #tpu.memory_space<vmem>>, vector<128x256xf32>
    %70 = arith.truncf %69 : vector<128x256xf32> to vector<128x256xbf16>
    %c0_30 = arith.constant 0 : index
    %c256_31 = arith.constant 256 : index
    %71 = vector.load %arg3[%c0_30, %c256_31] : memref<24x1152xf32, #tpu.memory_space<vmem>>, vector<1x256xf32>
    %72 = arith.truncf %68 : vector<8x128xf32> to vector<8x128xbf16>
    %cst_32 = arith.constant dense<0.000000e+00> : vector<8x256xf32>
    %73 = tpu.matmul %72, %70, %cst_32 {dimension_numbers = #tpu.dot_dimension_numbers<[1], [0], [0], [1], [0, 0, 1, 1], [], []>} : vector<8x128xbf16>, vector<128x256xbf16>, vector<8x256xf32> -> vector<8x256xf32>
    %74 = vector.broadcast %71 : vector<1x256xf32> to vector<8x256xf32>
    %75 = arith.addf %73, %74 : vector<8x256xf32>
    %76 = vector.extract_strided_slice %75 {offsets = [0, 0], sizes = [8, 128], strides = [1, 1]} : vector<8x256xf32> to vector<8x128xf32>
    %77 = vector.extract_strided_slice %75 {offsets = [0, 128], sizes = [8, 128], strides = [1, 1]} : vector<8x256xf32> to vector<8x128xf32>
    %c0_33 = arith.constant 0 : index
    %c0_34 = arith.constant 0 : index
    %78 = vector.load %arg1[%c0_33, %c0_34] : memref<8x128xf32, #tpu.memory_space<vmem>>, vector<8x128xf32>
    %cst_35 = arith.constant 5.000000e-01 : f32
    %79 = vector.broadcast %cst_35 : f32 to vector<8x128xf32>
    %80 = arith.mulf %79, %77 : vector<8x128xf32>
    %81 = math.exp %80 : vector<8x128xf32>
    %82 = arith.mulf %78, %81 : vector<8x128xf32>
    %83 = arith.addf %76, %82 : vector<8x128xf32>
    %c0_36 = arith.constant 0 : index
    %c512 = arith.constant 512 : index
    %84 = vector.load %arg2[%c0_36, %c512] : memref<128x1152xf32, #tpu.memory_space<vmem>>, vector<128x128xf32>
    %85 = arith.truncf %84 : vector<128x128xf32> to vector<128x128xbf16>
    %c0_37 = arith.constant 0 : index
    %c512_38 = arith.constant 512 : index
    %86 = vector.load %arg3[%c0_37, %c512_38] : memref<24x1152xf32, #tpu.memory_space<vmem>>, vector<1x128xf32>
    %87 = arith.truncf %83 : vector<8x128xf32> to vector<8x128xbf16>
    %cst_39 = arith.constant dense<0.000000e+00> : vector<8x128xf32>
    %88 = tpu.matmul %87, %85, %cst_39 {dimension_numbers = #tpu.dot_dimension_numbers<[1], [0], [0], [1], [0, 0, 1, 1], [], []>} : vector<8x128xbf16>, vector<128x128xbf16>, vector<8x128xf32> -> vector<8x128xf32>
    %89 = vector.broadcast %86 : vector<1x128xf32> to vector<8x128xf32>
    %90 = arith.addf %88, %89 : vector<8x128xf32>
    %c8_40 = arith.constant 8 : index
    %c512_41 = arith.constant 512 : index
    %91 = vector.load %arg3[%c8_40, %c512_41] : memref<24x1152xf32, #tpu.memory_space<vmem>>, vector<1x128xf32>
    %c16_42 = arith.constant 16 : index
    %c512_43 = arith.constant 512 : index
    %92 = vector.load %arg3[%c16_42, %c512_43] : memref<24x1152xf32, #tpu.memory_space<vmem>>, vector<1x128xf32>
    %cst_44 = arith.constant dense<0.000000e+00> : vector<128xf32>
    %93 = vector.multi_reduction <add>, %90, %cst_44 [0] : vector<8x128xf32> to vector<128xf32>
    %94 = vector.shape_cast %93 : vector<128xf32> to vector<1x128xf32>
    %cst_45 = arith.constant 8.000000e+00 : f32
    %95 = vector.broadcast %cst_45 : f32 to vector<1x128xf32>
    %96 = arith.divf %94, %95 : vector<1x128xf32>
    %97 = vector.broadcast %96 : vector<1x128xf32> to vector<8x128xf32>
    %98 = arith.subf %90, %97 : vector<8x128xf32>
    %99 = arith.mulf %98, %98 : vector<8x128xf32>
    %cst_46 = arith.constant dense<0.000000e+00> : vector<128xf32>
    %100 = vector.multi_reduction <add>, %99, %cst_46 [0] : vector<8x128xf32> to vector<128xf32>
    %101 = vector.shape_cast %100 : vector<128xf32> to vector<1x128xf32>
    %cst_47 = arith.constant 8.000000e+00 : f32
    %102 = vector.broadcast %cst_47 : f32 to vector<1x128xf32>
    %103 = arith.divf %101, %102 : vector<1x128xf32>
    %cst_48 = arith.constant 9.99999974E-6 : f32
    %104 = vector.broadcast %cst_48 : f32 to vector<1x128xf32>
    %105 = arith.addf %103, %104 : vector<1x128xf32>
    %106 = math.rsqrt %105 : vector<1x128xf32>
    %107 = vector.broadcast %106 : vector<1x128xf32> to vector<8x128xf32>
    %108 = arith.mulf %98, %107 : vector<8x128xf32>
    %109 = vector.broadcast %91 : vector<1x128xf32> to vector<8x128xf32>
    %110 = arith.mulf %108, %109 : vector<8x128xf32>
    %111 = vector.broadcast %92 : vector<1x128xf32> to vector<8x128xf32>
    %112 = arith.addf %110, %111 : vector<8x128xf32>
    %cst_49 = arith.constant 0.000000e+00 : f32
    %113 = vector.broadcast %cst_49 : f32 to vector<8x128xf32>
    %114 = arith.cmpf ogt, %112, %113 : vector<8x128xf32>
    %cst_50 = arith.constant 2.000000e-01 : f32
    %115 = vector.broadcast %cst_50 : f32 to vector<8x128xf32>
    %116 = arith.mulf %115, %112 : vector<8x128xf32>
    %117 = arith.select %114, %112, %116 : vector<8x128xi1>, vector<8x128xf32>
    %c0_51 = arith.constant 0 : index
    %c640 = arith.constant 640 : index
    %118 = vector.load %arg2[%c0_51, %c640] : memref<128x1152xf32, #tpu.memory_space<vmem>>, vector<128x128xf32>
    %119 = arith.truncf %118 : vector<128x128xf32> to vector<128x128xbf16>
    %c0_52 = arith.constant 0 : index
    %c640_53 = arith.constant 640 : index
    %120 = vector.load %arg3[%c0_52, %c640_53] : memref<24x1152xf32, #tpu.memory_space<vmem>>, vector<1x128xf32>
    %121 = arith.truncf %117 : vector<8x128xf32> to vector<8x128xbf16>
    %cst_54 = arith.constant dense<0.000000e+00> : vector<8x128xf32>
    %122 = tpu.matmul %121, %119, %cst_54 {dimension_numbers = #tpu.dot_dimension_numbers<[1], [0], [0], [1], [0, 0, 1, 1], [], []>} : vector<8x128xbf16>, vector<128x128xbf16>, vector<8x128xf32> -> vector<8x128xf32>
    %123 = vector.broadcast %120 : vector<1x128xf32> to vector<8x128xf32>
    %124 = arith.addf %122, %123 : vector<8x128xf32>
    %c8_55 = arith.constant 8 : index
    %c640_56 = arith.constant 640 : index
    %125 = vector.load %arg3[%c8_55, %c640_56] : memref<24x1152xf32, #tpu.memory_space<vmem>>, vector<1x128xf32>
    %c16_57 = arith.constant 16 : index
    %c640_58 = arith.constant 640 : index
    %126 = vector.load %arg3[%c16_57, %c640_58] : memref<24x1152xf32, #tpu.memory_space<vmem>>, vector<1x128xf32>
    %cst_59 = arith.constant dense<0.000000e+00> : vector<128xf32>
    %127 = vector.multi_reduction <add>, %124, %cst_59 [0] : vector<8x128xf32> to vector<128xf32>
    %128 = vector.shape_cast %127 : vector<128xf32> to vector<1x128xf32>
    %cst_60 = arith.constant 8.000000e+00 : f32
    %129 = vector.broadcast %cst_60 : f32 to vector<1x128xf32>
    %130 = arith.divf %128, %129 : vector<1x128xf32>
    %131 = vector.broadcast %130 : vector<1x128xf32> to vector<8x128xf32>
    %132 = arith.subf %124, %131 : vector<8x128xf32>
    %133 = arith.mulf %132, %132 : vector<8x128xf32>
    %cst_61 = arith.constant dense<0.000000e+00> : vector<128xf32>
    %134 = vector.multi_reduction <add>, %133, %cst_61 [0] : vector<8x128xf32> to vector<128xf32>
    %135 = vector.shape_cast %134 : vector<128xf32> to vector<1x128xf32>
    %cst_62 = arith.constant 8.000000e+00 : f32
    %136 = vector.broadcast %cst_62 : f32 to vector<1x128xf32>
    %137 = arith.divf %135, %136 : vector<1x128xf32>
    %cst_63 = arith.constant 9.99999974E-6 : f32
    %138 = vector.broadcast %cst_63 : f32 to vector<1x128xf32>
    %139 = arith.addf %137, %138 : vector<1x128xf32>
    %140 = math.rsqrt %139 : vector<1x128xf32>
    %141 = vector.broadcast %140 : vector<1x128xf32> to vector<8x128xf32>
    %142 = arith.mulf %132, %141 : vector<8x128xf32>
    %143 = vector.broadcast %125 : vector<1x128xf32> to vector<8x128xf32>
    %144 = arith.mulf %142, %143 : vector<8x128xf32>
    %145 = vector.broadcast %126 : vector<1x128xf32> to vector<8x128xf32>
    %146 = arith.addf %144, %145 : vector<8x128xf32>
    %cst_64 = arith.constant 0.000000e+00 : f32
    %147 = vector.broadcast %cst_64 : f32 to vector<8x128xf32>
    %148 = arith.cmpf ogt, %146, %147 : vector<8x128xf32>
    %cst_65 = arith.constant 2.000000e-01 : f32
    %149 = vector.broadcast %cst_65 : f32 to vector<8x128xf32>
    %150 = arith.mulf %149, %146 : vector<8x128xf32>
    %151 = arith.select %148, %146, %150 : vector<8x128xi1>, vector<8x128xf32>
    %c0_66 = arith.constant 0 : index
    %c768 = arith.constant 768 : index
    %152 = vector.load %arg2[%c0_66, %c768] : memref<128x1152xf32, #tpu.memory_space<vmem>>, vector<128x128xf32>
    %153 = arith.truncf %152 : vector<128x128xf32> to vector<128x128xbf16>
    %c0_67 = arith.constant 0 : index
    %c768_68 = arith.constant 768 : index
    %154 = vector.load %arg3[%c0_67, %c768_68] : memref<24x1152xf32, #tpu.memory_space<vmem>>, vector<1x128xf32>
    %155 = arith.truncf %151 : vector<8x128xf32> to vector<8x128xbf16>
    %cst_69 = arith.constant dense<0.000000e+00> : vector<8x128xf32>
    %156 = tpu.matmul %155, %153, %cst_69 {dimension_numbers = #tpu.dot_dimension_numbers<[1], [0], [0], [1], [0, 0, 1, 1], [], []>} : vector<8x128xbf16>, vector<128x128xbf16>, vector<8x128xf32> -> vector<8x128xf32>
    %157 = vector.broadcast %154 : vector<1x128xf32> to vector<8x128xf32>
    %158 = arith.addf %156, %157 : vector<8x128xf32>
    %c0_70 = arith.constant 0 : index
    %c0_71 = arith.constant 0 : index
    %159 = vector.load %arg4[%c0_70, %c0_71] : memref<8x128xf32, #tpu.memory_space<vmem>>, vector<8x128xf32>
    tpu.vector_store %arg4[%c0_70, %c0_71], %158 {strides = array<i32>} : memref<8x128xf32, #tpu.memory_space<vmem>>, vector<8x128xf32>,
    %c0_72 = arith.constant 0 : index
    %c896 = arith.constant 896 : index
    %160 = vector.load %arg2[%c0_72, %c896] : memref<128x1152xf32, #tpu.memory_space<vmem>>, vector<128x128xf32>
    %161 = arith.truncf %160 : vector<128x128xf32> to vector<128x128xbf16>
    %c0_73 = arith.constant 0 : index
    %c896_74 = arith.constant 896 : index
    %162 = vector.load %arg3[%c0_73, %c896_74] : memref<24x1152xf32, #tpu.memory_space<vmem>>, vector<1x128xf32>
    %163 = arith.truncf %117 : vector<8x128xf32> to vector<8x128xbf16>
    %cst_75 = arith.constant dense<0.000000e+00> : vector<8x128xf32>
    %164 = tpu.matmul %163, %161, %cst_75 {dimension_numbers = #tpu.dot_dimension_numbers<[1], [0], [0], [1], [0, 0, 1, 1], [], []>} : vector<8x128xbf16>, vector<128x128xbf16>, vector<8x128xf32> -> vector<8x128xf32>
    %165 = vector.broadcast %162 : vector<1x128xf32> to vector<8x128xf32>
    %166 = arith.addf %164, %165 : vector<8x128xf32>
    %c8_76 = arith.constant 8 : index
    %c896_77 = arith.constant 896 : index
    %167 = vector.load %arg3[%c8_76, %c896_77] : memref<24x1152xf32, #tpu.memory_space<vmem>>, vector<1x128xf32>
    %c16_78 = arith.constant 16 : index
    %c896_79 = arith.constant 896 : index
    %168 = vector.load %arg3[%c16_78, %c896_79] : memref<24x1152xf32, #tpu.memory_space<vmem>>, vector<1x128xf32>
    %cst_80 = arith.constant dense<0.000000e+00> : vector<128xf32>
    %169 = vector.multi_reduction <add>, %166, %cst_80 [0] : vector<8x128xf32> to vector<128xf32>
    %170 = vector.shape_cast %169 : vector<128xf32> to vector<1x128xf32>
    %cst_81 = arith.constant 8.000000e+00 : f32
    %171 = vector.broadcast %cst_81 : f32 to vector<1x128xf32>
    %172 = arith.divf %170, %171 : vector<1x128xf32>
    %173 = vector.broadcast %172 : vector<1x128xf32> to vector<8x128xf32>
    %174 = arith.subf %166, %173 : vector<8x128xf32>
    %175 = arith.mulf %174, %174 : vector<8x128xf32>
    %cst_82 = arith.constant dense<0.000000e+00> : vector<128xf32>
    %176 = vector.multi_reduction <add>, %175, %cst_82 [0] : vector<8x128xf32> to vector<128xf32>
    %177 = vector.shape_cast %176 : vector<128xf32> to vector<1x128xf32>
    %cst_83 = arith.constant 8.000000e+00 : f32
    %178 = vector.broadcast %cst_83 : f32 to vector<1x128xf32>
    %179 = arith.divf %177, %178 : vector<1x128xf32>
    %cst_84 = arith.constant 9.99999974E-6 : f32
    %180 = vector.broadcast %cst_84 : f32 to vector<1x128xf32>
    %181 = arith.addf %179, %180 : vector<1x128xf32>
    %182 = math.rsqrt %181 : vector<1x128xf32>
    %183 = vector.broadcast %182 : vector<1x128xf32> to vector<8x128xf32>
    %184 = arith.mulf %174, %183 : vector<8x128xf32>
    %185 = vector.broadcast %167 : vector<1x128xf32> to vector<8x128xf32>
    %186 = arith.mulf %184, %185 : vector<8x128xf32>
    %187 = vector.broadcast %168 : vector<1x128xf32> to vector<8x128xf32>
    %188 = arith.addf %186, %187 : vector<8x128xf32>
    %cst_85 = arith.constant 0.000000e+00 : f32
    %189 = vector.broadcast %cst_85 : f32 to vector<8x128xf32>
    %190 = arith.cmpf ogt, %188, %189 : vector<8x128xf32>
    %cst_86 = arith.constant 2.000000e-01 : f32
    %191 = vector.broadcast %cst_86 : f32 to vector<8x128xf32>
    %192 = arith.mulf %191, %188 : vector<8x128xf32>
    %193 = arith.select %190, %188, %192 : vector<8x128xi1>, vector<8x128xf32>
    %c0_87 = arith.constant 0 : index
    %c1024 = arith.constant 1024 : index
    %194 = vector.load %arg2[%c0_87, %c1024] : memref<128x1152xf32, #tpu.memory_space<vmem>>, vector<128x128xf32>
    %195 = arith.truncf %194 : vector<128x128xf32> to vector<128x128xbf16>
    %c0_88 = arith.constant 0 : index
    %c1024_89 = arith.constant 1024 : index
    %196 = vector.load %arg3[%c0_88, %c1024_89] : memref<24x1152xf32, #tpu.memory_space<vmem>>, vector<1x128xf32>
    %197 = arith.truncf %193 : vector<8x128xf32> to vector<8x128xbf16>
    %cst_90 = arith.constant dense<0.000000e+00> : vector<8x128xf32>
    %198 = tpu.matmul %197, %195, %cst_90 {dimension_numbers = #tpu.dot_dimension_numbers<[1], [0], [0], [1], [0, 0, 1, 1], [], []>} : vector<8x128xbf16>, vector<128x128xbf16>, vector<8x128xf32> -> vector<8x128xf32>
    %199 = vector.broadcast %196 : vector<1x128xf32> to vector<8x128xf32>
    %200 = arith.addf %198, %199 : vector<8x128xf32>
    %201 = arith.addf %76, %200 : vector<8x128xf32>
    %c0_91 = arith.constant 0 : index
    %c0_92 = arith.constant 0 : index
    %202 = vector.load %arg5[%c0_91, %c0_92] : memref<8x128xf32, #tpu.memory_space<vmem>>, vector<8x128xf32>
    tpu.vector_store %arg5[%c0_91, %c0_92], %201 {strides = array<i32>} : memref<8x128xf32, #tpu.memory_space<vmem>>, vector<8x128xf32>,
    return
  }
}

</mosaic_0001>

<bundles_post_ra>
// kernel: forward.1
= control target key start
LH: loop header
LB: loop body
LE: loop exit
PB: predicated region body
PF: predicated region fallthrough
CT: control target
= control target key end

     0   :  { %11 = vsyncpa [#allocation3], 0  ;;  %s1226_s0 = inlined_call_operand.vmem [shape: f32[8,128], index: 0, kind: input, shape index: {}]   ;;  %s1227_s1 = inlined_call_operand.vmem [shape: f32[8,128], index: 1, kind: input, shape index: {}]   ;;  %s1228_s2 = inlined_call_operand.hbm [shape: f32[128,1152], index: 2, kind: input, shape index: {}]   ;;  %s1229_s3 = inlined_call_operand.hbm [shape: f32[24,1152], index: 3, kind: input, shape index: {}]   ;;  %s1230_s4 = inlined_call_operand.hbm [shape: f32[8,128], index: 4, kind: output, shape index: {0}]   ;;  %s1231_s5 = inlined_call_operand.vmem [shape: f32[8,128], index: 5, kind: output, shape index: {1}]  }
   0x1   :  { %12 = vsyncpa [#allocation6], 0 }
   0x2   :  { %13 = vsyncpa [#allocation4], 0  ;;  %s1069_s18 = smov [#allocation2]   ;;  %s997_s22 = scalar_lea.hbm %s1228_s2, 18432 }
   0x3   :  { %s23_s19 = sshll.u32 %s1069_s18, 4  ;;  %p998_p0 = scmp.ne.s32.totalorder %s1228_s2, %s997_s22  ;;  %s24_s19 = int_to_ptr.vmem [resolvable:$true] %s23_s19 }
   0x4   :  { %p1001_p1 = scmp.lt.u32.totalorder %s997_s22, %s1228_s2 }
   0x6   :  { %p1003_p2 = pnand %p1001_p1, %p998_p0 }
   0x8   :  { %1006 = shalt.err (!%p1003_p2)
}
   0x9   :  { %s1007_s27 = scalar_lea.vmem %s24_s19, 18432  ;;  %p1012_p4 = scmp.lt.s32.totalorder %s24_s19, %s24_s19 }
   0xa   :  { %p1008_p3 = scmp.ne.s32.totalorder %s24_s19, %s1007_s27  ;;  %p1013_p5 = scmp.lt.s32.totalorder %s1007_s27, %s1007_s27 }
   0xc   :  { %p1014_p6 = por %p1013_p5, %p1012_p4 }
   0xe   :  { %p1015_p7 = pnand %p1014_p6, %p1008_p3 }
  0x10   :  { %1018 = shalt.err (!%p1015_p7)
}
  0x11   :  { %s1070_s28 = smov 1152   ;;  %s1071_s29 = smov 72  }
  0x12   :  { %29 = dma.hbm_to_vmem [thread:$0]  %s1228_s2, 18432, %s24_s19, [#allocation3], %s1070_s28, %s1070_s28, %s1071_s29  }
  0x13   :  { %s1072_s7 = smov [#allocation5]   ;;  %s1019_s11 = scalar_lea.hbm %s1229_s3, 3456 }
  0x14   :  { %s35_s8 = sshll.u32 %s1072_s7, 4  ;;  %p1020_p8 = scmp.ne.s32.totalorder %s1229_s3, %s1019_s11  ;;  %s36_s8 = int_to_ptr.vmem [resolvable:$true] %s35_s8 }
  0x15   :  { %p1023_p9 = scmp.lt.u32.totalorder %s1019_s11, %s1229_s3 }
  0x17   :  { %p1025_p10 = pnand %p1023_p9, %p1020_p8 }
  0x19   :  { %1028 = shalt.err (!%p1025_p10)
}
  0x1a   :  { %s1029_s16 = scalar_lea.vmem %s36_s8, 3456  ;;  %p1034_p12 = scmp.lt.s32.totalorder %s36_s8, %s36_s8 }
  0x1b   :  { %p1030_p11 = scmp.ne.s32.totalorder %s36_s8, %s1029_s16  ;;  %p1035_p13 = scmp.lt.s32.totalorder %s1029_s16, %s1029_s16 }
  0x1d   :  { %p1036_p0 = por %p1035_p13, %p1034_p12 }
  0x1f   :  { %p1037_p1 = pnand %p1036_p0, %p1030_p11 }
  0x21   :  { %1040 = shalt.err (!%p1037_p1)
}
  0x22   :  { %41 = dma.hbm_to_vmem [thread:$0]  %s1229_s3, 3456, %s36_s8, [#allocation6], %s1070_s28, %s1070_s28, %s1071_s29  }
  0x23   :  { %1063 = dma.done.wait [#allocation3], 18432  }
  0x24   :  { %1064 = vsyncadd [#allocation3], 4294948864 }
  0x25   :  { %1065 = dma.done.wait [#allocation6], 3456  }
  0x26   :  { %1066 = vsyncadd [#allocation6], 4294963840  ;;  %v1073_v0 = vmov 0.0   ;;  %vm1074_vm0 = vmmov 0   ;;  %v50_v1 = vld [vmem:[#allocation2] sm:$0xff]  ;;  %v51_v2 = vld [vmem:[#allocation2 + $0x48] sm:$0xff] }
  0x27   :  { %837 = vmatprep.subr.bf16.mxu0 %v1073_v0  ;;  %853 = vmatprep.mubr.msk.bf16.mxu0 %vm1074_vm0, %v1073_v0  ;;  %v52_v3 = vld [vmem:[#allocation2 + $0x90] sm:$0xff]  ;;  %v66_v4 = vpack.c.bf16 %v51_v2, %v50_v1  ;;  %v53_v5 = vld [vmem:[#allocation2 + $0xd8] sm:$0xff]  ;;  %v54_v7 = vld [vmem:[#allocation2 + $0x120] sm:$0xff] }
  0x28   :  { %857 = vmatprep.subr.bf16.mxu1 %v1073_v0  ;;  %873 = vmatprep.mubr.msk.bf16.mxu1 %vm1074_vm0, %v1073_v0  ;;  %v67_v6 = vpack.c.bf16 %v53_v5, %v52_v3  ;;  %v55_v8 = vld [vmem:[#allocation2 + $0x168] sm:$0xff]  ;;  %v56_v10 = vld [vmem:[#allocation2 + $0x1b0] sm:$0xff]  ;;  %v57_v11 = vld [vmem:[#allocation2 + $0x1f8] sm:$0xff] }
  0x29   :  { %838 = vmatpush3.bf16.msra.mxu0 %v66_v4  ;;  %v68_v9 = vpack.c.bf16 %v55_v8, %v54_v7  ;;  %v69_v12 = vpack.c.bf16 %v57_v11, %v56_v10  ;;  %v58_v13 = vld [vmem:[#allocation2 + $0x240] sm:$0xff]  ;;  %v59_v14 = vld [vmem:[#allocation2 + $0x288] sm:$0xff]  ;;  %v60_v16 = vld [vmem:[#allocation2 + $0x2d0] sm:$0xff] }
  0x2a   :  { %839 = vmatprep.subr.bf16.mxu0 %v1073_v0  ;;  %v70_v15 = vpack.c.bf16 %v59_v14, %v58_v13  ;;  %v61_v17 = vld [vmem:[#allocation2 + $0x318] sm:$0xff]  ;;  %v62_v19 = vld [vmem:[#allocation2 + $0x360] sm:$0xff]  ;;  %v63_v20 = vld [vmem:[#allocation2 + $0x3a8] sm:$0xff] }
  0x2b   :  { %v71_v18 = vpack.c.bf16 %v61_v17, %v60_v16  ;;  %v72_v21 = vpack.c.bf16 %v63_v20, %v62_v19  ;;  %v64_v22 = vld [vmem:[#allocation2 + $0x3f0] sm:$0xff]  ;;  %v65_v23 = vld [vmem:[#allocation2 + $0x438] sm:$0xff]  ;;  %v49_v25 = vld [vmem:[%s1226_s0] sm:$0xff] }
  0x2c   :  { %v73_v24 = vpack.c.bf16 %v65_v23, %v64_v22  ;;  %v75_v26 = vpack.c.bf16 %v49_v25, %v49_v25  ;;  %v143_v27 = vld [vmem:[#allocation2 + $0x8] sm:$0xff]  ;;  %v144_v28 = vld [vmem:[#allocation2 + $0x50] sm:$0xff]  ;;  %v145_v30 = vld [vmem:[#allocation2 + $0x98] sm:$0xff] }
  0x2d   :  { %840 = vmatpush3.bf16.msra.mxu0 %v67_v6  ;;  %v159_v29 = vpack.c.bf16 %v144_v28, %v143_v27  ;;  %v146_v31 = vld [vmem:[#allocation2 + $0xe0] sm:$0xff]  ;;  %v147_v33 = vld [vmem:[#allocation2 + $0x128] sm:$0xff]  ;;  %v148_v34 = vld [vmem:[#allocation2 + $0x170] sm:$0xff] }
  0x2e   :  { %841 = vmatprep.subr.bf16.mxu0 %v1073_v0  ;;  %v160_v32 = vpack.c.bf16 %v146_v31, %v145_v30  ;;  %v161_v35 = vpack.c.bf16 %v148_v34, %v147_v33  ;;  %v149_v36 = vld [vmem:[#allocation2 + $0x1b8] sm:$0xff]  ;;  %v150_v37 = vld [vmem:[#allocation2 + $0x200] sm:$0xff]  ;;  %v151_v39 = vld [vmem:[#allocation2 + $0x248] sm:$0xff] }
  0x2f   :  { %858 = vmatpush3.bf16.msra.mxu1 %v159_v29  ;;  %v162_v38 = vpack.c.bf16 %v150_v37, %v149_v36  ;;  %v152_v40 = vld [vmem:[#allocation2 + $0x290] sm:$0xff]  ;;  %v153_v42 = vld [vmem:[#allocation2 + $0x2d8] sm:$0xff]  ;;  %v154_v43 = vld [vmem:[#allocation2 + $0x320] sm:$0xff] }
  0x30   :  { %859 = vmatprep.subr.bf16.mxu1 %v1073_v0  ;;  %v163_v41 = vpack.c.bf16 %v152_v40, %v151_v39  ;;  %v164_v44 = vpack.c.bf16 %v154_v43, %v153_v42  ;;  %v155_v45 = vld [vmem:[#allocation2 + $0x368] sm:$0xff]  ;;  %v156_v46 = vld [vmem:[#allocation2 + $0x3b0] sm:$0xff]  ;;  %v157_v48 = vld [vmem:[#allocation2 + $0x3f8] sm:$0xff] }
  0x31   :  { %842 = vmatpush3.bf16.msra.mxu0 %v68_v9  ;;  %v165_v47 = vpack.c.bf16 %v156_v46, %v155_v45  ;;  %v158_v49 = vld [vmem:[#allocation2 + $0x440] sm:$0xff]  ;;  %v117_v14 = vld [vmem:[#allocation5 + $0x90] ss:$0 sm:$0xff]  ;;  %v236_v20 = vld [vmem:[#allocation2 + $0x18] sm:$0xff] }
  0x32   :  { %843 = vmatprep.subr.bf16.mxu0 %v1073_v0  ;;  %v166_v50 = vpack.c.bf16 %v158_v49, %v157_v48  ;;  %v74_v51 = vld [vmem:[#allocation5] ss:$0 sm:$0xff]  ;;  %v235_v23 = vld [vmem:[#allocation2 + $0x10] sm:$0xff]  ;;  %v241_v30 = vld [vmem:[#allocation2 + $0xe8] sm:$0xff] }
  0x33   :  { %860 = vmatpush3.bf16.msra.mxu1 %v160_v32  ;;  %v242_v27 = vld [vmem:[#allocation2 + $0xf0] sm:$0xff]  ;;  %v239_v29 = vld [vmem:[#allocation2 + $0xa0] sm:$0xff]  ;;  %v244_v32 = vld [vmem:[#allocation2 + $0x138] sm:$0xff] }
  0x34   :  { %861 = vmatprep.subr.bf16.mxu1 %v1073_v0  ;;  %v269_v31 = vpack.c.bf16 %v241_v30, %v239_v29  ;;  %v246_v33 = vld [vmem:[#allocation2 + $0x180] sm:$0xff]  ;;  %v245_v36 = vld [vmem:[#allocation2 + $0x178] sm:$0xff]  ;;  %v250_v39 = vld [vmem:[#allocation2 + $0x210] sm:$0xff] }
  0x35   :  { %844 = vmatpush3.bf16.msra.mxu0 %v69_v12  ;;  %v116_v12 = vld [vmem:[#allocation5 + $0x48] ss:$0 sm:$0xff]  ;;  %v272_v34 = vpack.c.bf16 %v246_v33, %v244_v32  ;;  %v254_v45 = vld [vmem:[#allocation2 + $0x2a0] sm:$0xff]  ;;  %v253_v48 = vld [vmem:[#allocation2 + $0x298] sm:$0xff] }
  0x36   :  { %845 = vmatprep.subr.bf16.mxu0 %v1073_v0  ;;  %v249_v42 = vld [vmem:[#allocation2 + $0x208] sm:$0xff] }
  0x37   :  { %862 = vmatpush3.bf16.msra.mxu1 %v161_v35  ;;  %v243_v35 = vld [vmem:[#allocation2 + $0x130] sm:$0xff] }
  0x38   :  { %863 = vmatprep.subr.bf16.mxu1 %v1073_v0  ;;  %v271_v37 = vpack.c.bf16 %v245_v36, %v243_v35  ;;  %v209_v36 = vld [vmem:[#allocation5 + $0x50] ss:$0 sm:$0xff] }
  0x39   :  { %846 = vmatpush3.bf16.msra.mxu0 %v70_v15 }
  0x3a   :  { %847 = vmatprep.subr.bf16.mxu0 %v1073_v0 }
  0x3b   :  { %864 = vmatpush3.bf16.msra.mxu1 %v162_v38  ;;  %v248_v38 = vld [vmem:[#allocation2 + $0x1c8] sm:$0xff] }
  0x3c   :  { %865 = vmatprep.subr.bf16.mxu1 %v1073_v0  ;;  %v274_v40 = vpack.c.bf16 %v250_v39, %v248_v38  ;;  %v210_v38 = vld [vmem:[#allocation5 + $0x98] ss:$0 sm:$0xff] }
  0x3d   :  { %848 = vmatpush3.bf16.msra.mxu0 %v71_v18 }
  0x3e   :  { %849 = vmatprep.subr.bf16.mxu0 %v1073_v0 }
  0x3f   :  { %866 = vmatpush3.bf16.msra.mxu1 %v163_v41  ;;  %v247_v41 = vld [vmem:[#allocation2 + $0x1c0] sm:$0xff] }
  0x40   :  { %867 = vmatprep.subr.bf16.mxu1 %v1073_v0  ;;  %v273_v43 = vpack.c.bf16 %v249_v42, %v247_v41 }
  0x41   :  { %850 = vmatpush3.bf16.msra.mxu0 %v72_v21  ;;  %v238_v21 = vld [vmem:[#allocation2 + $0x60] sm:$0xff] }
  0x42   :  { %851 = vmatprep.subr.bf16.mxu0 %v1073_v0  ;;  %v268_v22 = vpack.c.bf16 %v238_v21, %v236_v20 }
  0x43   :  { %868 = vmatpush3.bf16.msra.mxu1 %v164_v44  ;;  %v252_v44 = vld [vmem:[#allocation2 + $0x258] sm:$0xff] }
  0x44   :  { %869 = vmatprep.subr.bf16.mxu1 %v1073_v0  ;;  %v276_v46 = vpack.c.bf16 %v254_v45, %v252_v44  ;;  %v348_v44 = vld [vmem:[#allocation2 + $0x140] sm:$0xff]  ;;  %v349_v45 = vld [vmem:[#allocation2 + $0x188] sm:$0xff] }
  0x45   :  { %852 = vmatpush3.bf16.msra.mxu0 %v73_v24  ;;  %v237_v24 = vld [vmem:[#allocation2 + $0x58] sm:$0xff] }
  0x46   :  { %v267_v25 = vpack.c.bf16 %v237_v24, %v235_v23  ;;  %297 = vmatprep.subr.bf16.mxu0 %v268_v22 }
  0x47   :  { %870 = vmatpush3.bf16.msra.mxu1 %v165_v47  ;;  %v251_v47 = vld [vmem:[#allocation2 + $0x250] sm:$0xff] }
  0x48   :  { %854 = vmatmul.mubr.bf16.vlgmr.msra.gmra.mrb[0].mxu0 %v75_v26  ;;  %871 = vmatprep.subr.bf16.mxu1 %v1073_v0  ;;  %v240_v26 = vld [vmem:[#allocation2 + $0xa8] sm:$0xff]  ;;  %v275_v49 = vpack.c.bf16 %v253_v48, %v251_v47  ;;  %v350_v47 = vld [vmem:[#allocation2 + $0x1d0] sm:$0xff]  ;;  %v351_v48 = vld [vmem:[#allocation2 + $0x218] sm:$0xff] }
  0x49   :  { %298 = vmatpush1.bf16.msra.mxu0 %v267_v25  ;;  %v270_v28 = vpack.c.bf16 %v242_v27, %v240_v26 }
  0x4b   :  { %872 = vmatpush3.bf16.msra.mxu1 %v166_v50  ;;  %299 = vmatprep.subr.bf16.mxu0 %v270_v28  ;;  %v256_v50 = vld [vmem:[#allocation2 + $0x2e8] sm:$0xff] }
  0x4c   :  { %877 = vmatprep.subr.bf16.mxu1 %v1073_v0 }
  0x4d   :  { %300 = vmatpush1.bf16.msra.mxu0 %v269_v31 }
  0x4e   :  { %301 = vmatprep.subr.bf16.mxu0 %v272_v34 }
  0x51   :  { %302 = vmatpush1.bf16.msra.mxu0 %v271_v37 }
  0x52   :  { %303 = vmatprep.subr.bf16.mxu0 %v274_v40 }
  0x55   :  { %304 = vmatpush1.bf16.msra.mxu0 %v273_v43 }
  0x56   :  { %305 = vmatprep.subr.bf16.mxu0 %v276_v46  ;;  %v362_v46 = vpack.c.bf16 %v349_v45, %v348_v44 }
  0x59   :  { %306 = vmatpush1.bf16.msra.mxu0 %v275_v49  ;;  %v363_v49 = vpack.c.bf16 %v351_v48, %v350_v47 }
 0x11b   :  { %v110_v52 = vpop.f32.mrb[0].mxu0 }
 0x11c   :  { %v111_v53 = vadd.f32 %v110_v52, %v74_v51  ;;  %v855_v54 = vpop.f32.mrb[1].mxu0  ;;  %v258_v51 = vld [vmem:[#allocation2 + $0x330] sm:$0xff] }
 0x11d   :  { %v113_v55 = vpop.f32.mrb[2].mxu0  ;;  %v278_v52 = vpack.c.bf16 %v258_v51, %v256_v50  ;;  %v257_v54 = vld [vmem:[#allocation2 + $0x328] sm:$0xff]  ;;  %v352_v50 = vld [vmem:[#allocation2 + $0x260] sm:$0xff] }
 0x11e   :  { %v118_v56 = vrot.slane %v111_v53, 4  ;;  %v856_v57 = vpop.f32.mrb[3].mxu0  ;;  %v353_v51 = vld [vmem:[#allocation2 + $0x2a8] sm:$0xff] }
 0x11f   :  { %307 = vmatprep.subr.bf16.mxu0 %v278_v52  ;;  %v262_v57 = vld [vmem:[#allocation2 + $0x3c0] sm:$0xff]  ;;  %v364_v52 = vpack.c.bf16 %v353_v51, %v352_v50 }
 0x120   :  { %v119_v58 = vadd.f32 %v118_v56, %v111_v53  ;;  %v260_v56 = vld [vmem:[#allocation2 + $0x378] sm:$0xff] }
 0x122   :  { %v120_v59 = vrot.slane %v119_v58, 2 }
 0x124   :  { %v121_v60 = vadd.f32 %v120_v59, %v119_v58  ;;  %v280_v58 = vpack.c.bf16 %v262_v57, %v260_v56  ;;  %v259_v59 = vld [vmem:[#allocation2 + $0x370] sm:$0xff]  ;;  %v356_v56 = vld [vmem:[#allocation2 + $0x380] sm:$0xff]  ;;  %v357_v57 = vld [vmem:[#allocation2 + $0x3c8] sm:$0xff] }
 0x126   :  { %v122_v61 = vrot.slane %v121_v60, 1 }
 0x128   :  { %v123_v62 = vadd.f32 %v122_v61, %v121_v60  ;;  %v261_v60 = vld [vmem:[#allocation2 + $0x3b8] sm:$0xff] }
 0x129   :  { %v279_v61 = vpack.c.bf16 %v261_v60, %v259_v59  ;;  %v358_v59 = vld [vmem:[#allocation2 + $0x410] sm:$0xff]  ;;  %v359_v60 = vld [vmem:[#allocation2 + $0x458] sm:$0xff] }
 0x12a   :  { %v125_v63 = vmul.f32 0.125, %v123_v62  ;;  %v264_v62 = vld [vmem:[#allocation2 + $0x408] sm:$0xff] }
 0x12c   :  { %v126_v1 = vsub.f32 %v111_v53, %v125_v63  ;;  %v255_v53 = vld [vmem:[#allocation2 + $0x2e0] sm:$0xff]  ;;  %v266_v63 = vld [vmem:[#allocation2 + $0x450] sm:$0xff] }
 0x12d   :  { %v277_v55 = vpack.c.bf16 %v257_v54, %v255_v53  ;;  %v354_v53 = vld [vmem:[#allocation2 + $0x2f0] sm:$0xff]  ;;  %v355_v54 = vld [vmem:[#allocation2 + $0x338] sm:$0xff] }
 0x12e   :  { %v127_v2 = vmul.f32 %v126_v1, %v126_v1 }
 0x12f   :  { %308 = vmatpush1.bf16.msra.mxu0 %v277_v55  ;;  %v365_v55 = vpack.c.bf16 %v355_v54, %v354_v53 }
 0x130   :  { %v128_v3 = vrot.slane %v127_v2, 4  ;;  %309 = vmatprep.subr.bf16.mxu0 %v280_v58  ;;  %v366_v58 = vpack.c.bf16 %v357_v57, %v356_v56 }
 0x132   :  { %v129_v4 = vadd.f32 %v128_v3, %v127_v2  ;;  %v282_v2 = vpack.c.bf16 %v266_v63, %v264_v62  ;;  %v265_v3 = vld [vmem:[#allocation2 + $0x448] sm:$0xff]  ;;  %v287_v62 = vlaneseq }
 0x133   :  { %310 = vmatpush1.bf16.msra.mxu0 %v279_v61  ;;  %v367_v61 = vpack.c.bf16 %v359_v60, %v358_v59 }
 0x134   :  { %v130_v5 = vrot.slane %v129_v4, 2  ;;  %311 = vmatprep.subr.bf16.mxu0 %v282_v2  ;;  %v288_v63 = vshrl.u32 %v287_v62, 7  ;;  %v284_v2 = vld [vmem:[#allocation5 + $0x10] ss:$8 sm:$0x3] }
 0x136   :  { %v131_v6 = vadd.f32 %v130_v5, %v129_v4  ;;  %v1075_v4 = vmov 0  }
 0x137   :  { %329 = vmatprep.mubr.bf16.mxu0 %v1075_v4 }
 0x138   :  { %v132_v7 = vrot.slane %v131_v6, 1 }
 0x13a   :  { %v133_v8 = vadd.f32 %v132_v7, %v131_v6  ;;  %v344_v6 = vld [vmem:[#allocation2 + $0x20] sm:$0xff]  ;;  %v345_v7 = vld [vmem:[#allocation2 + $0x68] sm:$0xff] }
 0x13c   :  { %v134_v9 = vmul.f32 0.125, %v133_v8  ;;  %v346_v8 = vld [vmem:[#allocation2 + $0xb0] sm:$0xff] }
 0x13e   :  { %v135_v10 = vadd.f32 1e-05, %v134_v9  ;;  %v360_v9 = vpack.c.bf16 %v345_v7, %v344_v6 }
 0x140   :  { %985 = vrsqrt.f32 %v135_v10  ;;  %v347_v10 = vld [vmem:[#allocation2 + $0xf8] sm:$0xff] }
 0x14a   :  { %v986_v11 = vpop.eup %985 }
 0x14b   :  { %v137_v13 = vmul.f32 %v986_v11, %v126_v1  ;;  %v263_v1 = vld [vmem:[#allocation2 + $0x400] sm:$0xff]  ;;  %v361_v11 = vpack.c.bf16 %v347_v10, %v346_v8 }
 0x14c   :  { %v281_v5 = vpack.c.bf16 %v265_v3, %v263_v1  ;;  %v293_v1 = vsub.s32 1, %v288_v63 }
 0x14d   :  { %v138_v15 = vmul.f32 %v137_v13, %v116_v12  ;;  %v167_v12 = vld [vmem:[#allocation5 + $0x8] ss:$0 sm:$0xff] }
 0x14e   :  { %312 = vmatpush1.bf16.msra.mxu0 %v281_v5  ;;  %v294_v3 = vrot.slane %v284_v2, %v293_v1 }
 0x14f   :  { %v139_v16 = vadd.f32 %v138_v15, %v117_v14  ;;  %897 = vmatprep.subr.bf16.mxu0 %v1073_v0 }
 0x151   :  { %vm140_vm1 = vcmp.gt.f32.partialorder %v139_v16, 0.0  ;;  %v141_v17 = vmul.f32 0.2, %v139_v16 }
 0x153   :  { %v142_v18 = vsel %vm140_vm1, %v139_v16, %v141_v17 }
 0x154   :  { %v168_v19 = vpack.c.bf16 %v142_v18, %v142_v18 }
 0x156   :  { %874 = vmatmul.mubr.bf16.vlgmr.msra.gmra.mrb[0].mxu1 %v168_v19 }
 0x157   :  { %893 = vmatprep.mubr.msk.bf16.mxu1 %vm1074_vm0, %v1073_v0  ;;  %878 = vmatpush3.bf16.msra.mxu1 %v360_v9 }
 0x158   :  { %879 = vmatprep.subr.bf16.mxu1 %v1073_v0 }
 0x15b   :  { %880 = vmatpush3.bf16.msra.mxu1 %v361_v11  ;;  %v289_v11 = vsub.s32 0, %v288_v63 }
 0x15c   :  { %881 = vmatprep.subr.bf16.mxu1 %v1073_v0 }
 0x15f   :  { %882 = vmatpush3.bf16.msra.mxu1 %v362_v46 }
 0x160   :  { %883 = vmatprep.subr.bf16.mxu1 %v1073_v0 }
 0x163   :  { %884 = vmatpush3.bf16.msra.mxu1 %v363_v49 }
 0x164   :  { %885 = vmatprep.subr.bf16.mxu1 %v1073_v0 }
 0x167   :  { %886 = vmatpush3.bf16.msra.mxu1 %v364_v52 }
 0x168   :  { %887 = vmatprep.subr.bf16.mxu1 %v1073_v0 }
 0x16b   :  { %888 = vmatpush3.bf16.msra.mxu1 %v365_v55 }
 0x16c   :  { %889 = vmatprep.subr.bf16.mxu1 %v1073_v0 }
 0x16f   :  { %890 = vmatpush3.bf16.msra.mxu1 %v366_v58 }
 0x170   :  { %891 = vmatprep.subr.bf16.mxu1 %v1073_v0 }
 0x173   :  { %892 = vmatpush3.bf16.msra.mxu1 %v367_v61 }
 0x174   :  { %917 = vmatprep.subr.bf16.mxu1 %v1073_v0 }
 0x229   :  { %v203_v13 = vpop.f32.mrb[0].mxu1 }
 0x22a   :  { %v204_v14 = vadd.f32 %v203_v13, %v167_v12  ;;  %v875_v15 = vpop.f32.mrb[1].mxu1  ;;  %v290_v12 = vrot.slane %v284_v2, %v289_v11  ;;  %v338_v13 = vld [vmem:[%s1227_s1] sm:$0xff]  ;;  %s1076_s1 = smov [#allocation7]  }
 0x22b   :  { %v206_v16 = vpop.f32.mrb[2].mxu1  ;;  %s760_s20 = sshll.u32 %s1076_s1, 4  ;;  %s761_s20 = int_to_ptr.vmem [resolvable:$true] %s760_s20 }
 0x22c   :  { %v211_v17 = vrot.slane %v204_v14, 4  ;;  %v876_v18 = vpop.f32.mrb[3].mxu1  ;;  %s1041_s21 = scalar_lea.vmem %s761_s20, 128  ;;  %p1046_p3 = scmp.lt.s32.totalorder %s761_s20, %s761_s20 }
 0x22d   :  { %p1042_p2 = scmp.ne.s32.totalorder %s761_s20, %s1041_s21  ;;  %p1047_p4 = scmp.lt.s32.totalorder %s1041_s21, %s1041_s21 }
 0x22e   :  { %v212_v19 = vadd.f32 %v211_v17, %v204_v14 }
 0x22f   :  { %p1048_p5 = por %p1047_p4, %p1046_p3 }
 0x230   :  { %v213_v20 = vrot.slane %v212_v19, 2 }
 0x231   :  { %p1049_p6 = pnand %p1048_p5, %p1042_p2 }
 0x232   :  { %v214_v21 = vadd.f32 %v213_v20, %v212_v19  ;;  %v436_v19 = vld [vmem:[#allocation2 + $0x28] sm:$0xff]  ;;  %v437_v20 = vld [vmem:[#allocation2 + $0x70] sm:$0xff] }
 0x234   :  { %v215_v22 = vrot.slane %v214_v21, 1 }
 0x236   :  { %v216_v23 = vadd.f32 %v215_v22, %v214_v21  ;;  %v452_v21 = vpack.c.bf16 %v437_v20, %v436_v19  ;;  %v438_v22 = vld [vmem:[#allocation2 + $0xb8] sm:$0xff]  ;;  %v600_v20 = vld [vmem:[#allocation2 + $0x1a0] sm:$0xff] }
 0x237   :  { %v599_v19 = vld [vmem:[#allocation2 + $0x158] sm:$0xff] }
 0x238   :  { %v217_v24 = vmul.f32 0.125, %v216_v23  ;;  %v439_v23 = vld [vmem:[#allocation2 + $0x100] sm:$0xff] }
 0x23a   :  { %v218_v25 = vsub.f32 %v204_v14, %v217_v24  ;;  %v453_v24 = vpack.c.bf16 %v439_v23, %v438_v22  ;;  %v601_v22 = vld [vmem:[#allocation2 + $0x1e8] sm:$0xff]  ;;  %v602_v23 = vld [vmem:[#allocation2 + $0x230] sm:$0xff] }
 0x23c   :  { %v219_v26 = vmul.f32 %v218_v25, %v218_v25 }
 0x23e   :  { %v220_v27 = vrot.slane %v219_v26, 4 }
 0x240   :  { %v221_v28 = vadd.f32 %v220_v27, %v219_v26  ;;  %v441_v26 = vld [vmem:[#allocation2 + $0x190] sm:$0xff] }
 0x242   :  { %v222_v29 = vrot.slane %v221_v28, 2 }
 0x244   :  { %v223_v30 = vadd.f32 %v222_v29, %v221_v28  ;;  %v442_v28 = vld [vmem:[#allocation2 + $0x1d8] sm:$0xff]  ;;  %v443_v29 = vld [vmem:[#allocation2 + $0x220] sm:$0xff] }
 0x246   :  { %v224_v31 = vrot.slane %v223_v30, 1 }
 0x248   :  { %v225_v32 = vadd.f32 %v224_v31, %v223_v30  ;;  %v455_v30 = vpack.c.bf16 %v443_v29, %v442_v28  ;;  %v444_v31 = vld [vmem:[#allocation2 + $0x268] sm:$0xff]  ;;  %v606_v29 = vld [vmem:[#allocation2 + $0x350] sm:$0xff] }
 0x249   :  { %v605_v28 = vld [vmem:[#allocation2 + $0x308] sm:$0xff] }
 0x24a   :  { %v226_v33 = vmul.f32 0.125, %v225_v32  ;;  %v445_v32 = vld [vmem:[#allocation2 + $0x2b0] sm:$0xff] }
 0x24c   :  { %v227_v34 = vadd.f32 1e-05, %v226_v33  ;;  %v456_v33 = vpack.c.bf16 %v445_v32, %v444_v31  ;;  %v607_v31 = vld [vmem:[#allocation2 + $0x398] sm:$0xff]  ;;  %v608_v32 = vld [vmem:[#allocation2 + $0x3e0] sm:$0xff] }
 0x24e   :  { %987 = vrsqrt.f32 %v227_v34  ;;  %v446_v34 = vld [vmem:[#allocation2 + $0x2f8] sm:$0xff] }
 0x258   :  { %v988_v35 = vpop.eup %987 }
 0x259   :  { %v229_v37 = vmul.f32 %v988_v35, %v218_v25  ;;  %v440_v25 = vld [vmem:[#allocation2 + $0x148] sm:$0xff]  ;;  %v447_v35 = vld [vmem:[#allocation2 + $0x340] sm:$0xff] }
 0x25a   :  { %v454_v27 = vpack.c.bf16 %v441_v26, %v440_v25  ;;  %v603_v25 = vld [vmem:[#allocation2 + $0x278] sm:$0xff]  ;;  %v604_v26 = vld [vmem:[#allocation2 + $0x2c0] sm:$0xff] }
 0x25b   :  { %v230_v39 = vmul.f32 %v229_v37, %v209_v36  ;;  %v457_v36 = vpack.c.bf16 %v447_v35, %v446_v34  ;;  %v448_v37 = vld [vmem:[#allocation2 + $0x388] sm:$0xff]  ;;  %v610_v35 = vld [vmem:[#allocation2 + $0x470] sm:$0xff] }
 0x25c   :  { %v609_v34 = vld [vmem:[#allocation2 + $0x428] sm:$0xff] }
 0x25d   :  { %v231_v40 = vadd.f32 %v230_v39, %v210_v38  ;;  %v449_v38 = vld [vmem:[#allocation2 + $0x3d0] sm:$0xff] }
 0x25e   :  { %v458_v39 = vpack.c.bf16 %v449_v38, %v448_v37  ;;  %v528_v37 = vld [vmem:[#allocation2 + $0x30] sm:$0xff]  ;;  %v529_v38 = vld [vmem:[#allocation2 + $0x78] sm:$0xff] }
 0x25f   :  { %vm232_vm2 = vcmp.gt.f32.partialorder %v231_v40, 0.0  ;;  %v233_v41 = vmul.f32 0.2, %v231_v40 }
 0x261   :  { %v234_v42 = vsel %vm232_vm2, %v231_v40, %v233_v41  ;;  %v450_v40 = vld [vmem:[#allocation2 + $0x418] sm:$0xff]  ;;  %v451_v41 = vld [vmem:[#allocation2 + $0x460] sm:$0xff] }
 0x262   :  { %v285_v43 = vpack.c.bf16 %v234_v42, %v234_v42  ;;  %v459_v42 = vpack.c.bf16 %v451_v41, %v450_v40  ;;  %v530_v40 = vld [vmem:[#allocation2 + $0xc0] sm:$0xff]  ;;  %v531_v41 = vld [vmem:[#allocation2 + $0x108] sm:$0xff] }
 0x264   :  { %330 = vmatmul.mubr.bf16.vlgmr.msra.gmra.mrb[4].mxu0 %v285_v43  ;;  %v368_v43 = vld [vmem:[#allocation5 + $0x20] ss:$0 sm:$0xff] }
 0x265   :  { %913 = vmatprep.mubr.msk.bf16.mxu0 %vm1074_vm0, %v1073_v0  ;;  %898 = vmatpush3.bf16.msra.mxu0 %v452_v21  ;;  %v613_v21 = vpack.c.bf16 %v600_v20, %v599_v19  ;;  %v619_v19 = vld [vmem:[#allocation5 + $0x38] ss:$0 sm:$0xff] }
 0x266   :  { %899 = vmatprep.subr.bf16.mxu0 %v1073_v0 }
 0x269   :  { %900 = vmatpush3.bf16.msra.mxu0 %v453_v24  ;;  %v614_v24 = vpack.c.bf16 %v602_v23, %v601_v22 }
 0x26a   :  { %901 = vmatprep.subr.bf16.mxu0 %v1073_v0 }
 0x26d   :  { %902 = vmatpush3.bf16.msra.mxu0 %v454_v27  ;;  %v615_v27 = vpack.c.bf16 %v604_v26, %v603_v25 }
 0x26e   :  { %903 = vmatprep.subr.bf16.mxu0 %v1073_v0 }
 0x271   :  { %904 = vmatpush3.bf16.msra.mxu0 %v455_v30  ;;  %v616_v30 = vpack.c.bf16 %v606_v29, %v605_v28 }
 0x272   :  { %905 = vmatprep.subr.bf16.mxu0 %v1073_v0 }
 0x275   :  { %906 = vmatpush3.bf16.msra.mxu0 %v456_v33  ;;  %v617_v33 = vpack.c.bf16 %v608_v32, %v607_v31 }
 0x276   :  { %907 = vmatprep.subr.bf16.mxu0 %v1073_v0 }
 0x279   :  { %908 = vmatpush3.bf16.msra.mxu0 %v457_v36  ;;  %v618_v36 = vpack.c.bf16 %v610_v35, %v609_v34  ;;  %v502_v35 = vld [vmem:[#allocation5 + $0x70] ss:$0 sm:$0xff] }
 0x27a   :  { %909 = vmatprep.subr.bf16.mxu0 %v1073_v0 }
 0x27d   :  { %910 = vmatpush3.bf16.msra.mxu0 %v458_v39  ;;  %v544_v39 = vpack.c.bf16 %v529_v38, %v528_v37  ;;  %v503_v38 = vld [vmem:[#allocation5 + $0xb8] ss:$0 sm:$0xff] }
 0x27e   :  { %911 = vmatprep.subr.bf16.mxu0 %v1073_v0 }
 0x281   :  { %912 = vmatpush3.bf16.msra.mxu0 %v459_v42  ;;  %v545_v42 = vpack.c.bf16 %v531_v41, %v530_v40 }
 0x282   :  { %937 = vmatprep.subr.bf16.mxu0 %v1073_v0 }
 0x337   :  { %v331_v4 = vpop.f32.mrb[4].mxu0 }
 0x338   :  { %v333_v5 = vpop.f32.mrb[5].mxu0  ;;  %v1171_v15 = vadd.f32 %v331_v4, %v290_v12  ;;  %v410_v4 = vld [vmem:[#allocation5 + $0x68] ss:$0 sm:$0xff] }
 0x339   :  { %v334_v6 = vadd.f32 %v333_v5, %v294_v3  ;;  %v335_v7 = vpop.f32.mrb[6].mxu0 }
 0x33a   :  { %v336_v8 = vpop.f32.mrb[7].mxu0 }
 0x33b   :  { %v339_v9 = vmul.f32 0.5, %v334_v6  ;;  %v411_v6 = vld [vmem:[#allocation5 + $0xb0] ss:$0 sm:$0xff] }
 0x33d   :  { %v340_v10 = vmul.f32 1.442695, %v339_v9  ;;  %v595_v9 = vld [vmem:[#allocation2 + $0x38] sm:$0xff] }
 0x33f   :  { %989 = vpow2.f32 %v340_v10  ;;  %v596_v10 = vld [vmem:[#allocation2 + $0x80] sm:$0xff] }
 0x349   :  { %v990_v14 = vpop.eup %989 }
 0x34a   :  { %v342_v16 = vmul.f32 %v990_v14, %v338_v13  ;;  %v611_v13 = vpack.c.bf16 %v596_v10, %v595_v9 }
 0x34c   :  { %v343_v17 = vadd.f32 %v342_v16, %v1171_v15  ;;  %v597_v16 = vld [vmem:[#allocation2 + $0xc8] sm:$0xff] }
 0x34e   :  { %v369_v18 = vpack.c.bf16 %v343_v17, %v343_v17  ;;  %v598_v17 = vld [vmem:[#allocation2 + $0x110] sm:$0xff] }
 0x350   :  { %894 = vmatmul.mubr.bf16.vlgmr.msra.gmra.mrb[4].mxu1 %v369_v18  ;;  %v612_v18 = vpack.c.bf16 %v598_v17, %v597_v16 }
 0x351   :  { %933 = vmatprep.mubr.msk.bf16.mxu1 %vm1074_vm0, %v1073_v0  ;;  %918 = vmatpush3.bf16.msra.mxu1 %v544_v39 }
 0x352   :  { %919 = vmatprep.subr.bf16.mxu1 %v1073_v0 }
 0x355   :  { %920 = vmatpush3.bf16.msra.mxu1 %v545_v42 }
 0x356   :  { %921 = vmatprep.subr.bf16.mxu1 %v1073_v0 }
 0x423   :  { %v404_v44 = vpop.f32.mrb[4].mxu1 }
 0x424   :  { %v405_v45 = vadd.f32 %v404_v44, %v368_v43  ;;  %v895_v46 = vpop.f32.mrb[5].mxu1  ;;  %v532_v43 = vld [vmem:[#allocation2 + $0x150] sm:$0xff]  ;;  %v533_v44 = vld [vmem:[#allocation2 + $0x198] sm:$0xff] }
 0x425   :  { %v407_v47 = vpop.f32.mrb[6].mxu1  ;;  %v534_v46 = vld [vmem:[#allocation2 + $0x1e0] sm:$0xff] }
 0x426   :  { %v412_v48 = vrot.slane %v405_v45, 4  ;;  %v896_v49 = vpop.f32.mrb[7].mxu1  ;;  %v535_v47 = vld [vmem:[#allocation2 + $0x228] sm:$0xff] }
 0x427   :  { %v536_v49 = vld [vmem:[#allocation2 + $0x270] sm:$0xff] }
 0x428   :  { %v413_v50 = vadd.f32 %v412_v48, %v405_v45  ;;  %v547_v48 = vpack.c.bf16 %v535_v47, %v534_v46 }
 0x42a   :  { %v414_v51 = vrot.slane %v413_v50, 2 }
 0x42c   :  { %v415_v52 = vadd.f32 %v414_v51, %v413_v50  ;;  %v537_v50 = vld [vmem:[#allocation2 + $0x2b8] sm:$0xff] }
 0x42d   :  { %v548_v51 = vpack.c.bf16 %v537_v50, %v536_v49 }
 0x42e   :  { %v416_v53 = vrot.slane %v415_v52, 1 }
 0x430   :  { %v417_v54 = vadd.f32 %v416_v53, %v415_v52  ;;  %v538_v52 = vld [vmem:[#allocation2 + $0x300] sm:$0xff]  ;;  %v539_v53 = vld [vmem:[#allocation2 + $0x348] sm:$0xff] }
 0x432   :  { %v418_v55 = vmul.f32 0.125, %v417_v54  ;;  %v549_v54 = vpack.c.bf16 %v539_v53, %v538_v52  ;;  %v688_v52 = vld [vmem:[#allocation2 + $0xd0] sm:$0xff]  ;;  %v689_v53 = vld [vmem:[#allocation2 + $0x118] sm:$0xff] }
 0x434   :  { %v419_v56 = vsub.f32 %v405_v45, %v418_v55  ;;  %v546_v45 = vpack.c.bf16 %v533_v44, %v532_v43  ;;  %v540_v55 = vld [vmem:[#allocation2 + $0x390] sm:$0xff]  ;;  %v686_v44 = vld [vmem:[#allocation2 + $0x40] sm:$0xff] }
 0x436   :  { %v420_v57 = vmul.f32 %v419_v56, %v419_v56  ;;  %922 = vmatpush3.bf16.msra.mxu1 %v546_v45  ;;  %v687_v45 = vld [vmem:[#allocation2 + $0x88] sm:$0xff] }
 0x437   :  { %923 = vmatprep.subr.bf16.mxu1 %v1073_v0  ;;  %v702_v49 = vpack.c.bf16 %v687_v45, %v686_v44 }
 0x438   :  { %v421_v58 = vrot.slane %v420_v57, 4 }
 0x43a   :  { %v422_v59 = vadd.f32 %v421_v58, %v420_v57  ;;  %924 = vmatpush3.bf16.msra.mxu1 %v547_v48  ;;  %v542_v58 = vld [vmem:[#allocation2 + $0x420] sm:$0xff] }
 0x43b   :  { %925 = vmatprep.subr.bf16.mxu1 %v1073_v0 }
 0x43c   :  { %v423_v60 = vrot.slane %v422_v59, 2 }
 0x43e   :  { %v424_v61 = vadd.f32 %v423_v60, %v422_v59  ;;  %926 = vmatpush3.bf16.msra.mxu1 %v548_v51  ;;  %v543_v59 = vld [vmem:[#allocation2 + $0x468] sm:$0xff] }
 0x43f   :  { %927 = vmatprep.subr.bf16.mxu1 %v1073_v0  ;;  %v551_v60 = vpack.c.bf16 %v543_v59, %v542_v58  ;;  %v691_v58 = vld [vmem:[#allocation2 + $0x1a8] sm:$0xff] }
 0x440   :  { %v425_v62 = vrot.slane %v424_v61, 1 }
 0x442   :  { %v426_v63 = vadd.f32 %v425_v62, %v424_v61  ;;  %928 = vmatpush3.bf16.msra.mxu1 %v549_v54  ;;  %v460_v61 = vld [vmem:[#allocation5 + $0x28] ss:$0 sm:$0xff] }
 0x443   :  { %929 = vmatprep.subr.bf16.mxu1 %v1073_v0 }
 0x444   :  { %v427_v1 = vmul.f32 0.125, %v426_v63 }
 0x446   :  { %v428_v2 = vadd.f32 1e-05, %v427_v1 }
 0x448   :  { %991 = vrsqrt.f32 %v428_v2 }
 0x452   :  { %v992_v3 = vpop.eup %991 }
 0x453   :  { %v430_v5 = vmul.f32 %v992_v3, %v419_v56  ;;  %v541_v56 = vld [vmem:[#allocation2 + $0x3d8] sm:$0xff] }
 0x454   :  { %v550_v57 = vpack.c.bf16 %v541_v56, %v540_v55  ;;  %v703_v55 = vpack.c.bf16 %v689_v53, %v688_v52 }
 0x455   :  { %v431_v7 = vmul.f32 %v430_v5, %v410_v4 }
 0x456   :  { %930 = vmatpush3.bf16.msra.mxu1 %v550_v57  ;;  %v690_v57 = vld [vmem:[#allocation2 + $0x160] sm:$0xff] }
 0x457   :  { %v432_v8 = vadd.f32 %v431_v7, %v411_v6  ;;  %931 = vmatprep.subr.bf16.mxu1 %v1073_v0 }
 0x459   :  { %vm433_vm3 = vcmp.gt.f32.partialorder %v432_v8, 0.0  ;;  %v434_v11 = vmul.f32 0.2, %v432_v8 }
 0x45a   :  { %932 = vmatpush3.bf16.msra.mxu1 %v551_v60  ;;  %v704_v60 = vpack.c.bf16 %v691_v58, %v690_v57 }
 0x45b   :  { %v435_v12 = vsel %vm433_vm3, %v432_v8, %v434_v11  ;;  %957 = vmatprep.subr.bf16.mxu1 %v1073_v0 }
 0x45c   :  { %v461_v14 = vpack.c.bf16 %v435_v12, %v435_v12 }
 0x45e   :  { %914 = vmatmul.mubr.bf16.vlgmr.msra.gmra.mrb[8].mxu0 %v461_v14 }
 0x45f   :  { %938 = vmatpush3.bf16.msra.mxu0 %v611_v13  ;;  %953 = vmatprep.mubr.msk.bf16.mxu0 %vm1074_vm0, %v1073_v0 }
 0x460   :  { %939 = vmatprep.subr.bf16.mxu0 %v1073_v0 }
 0x463   :  { %940 = vmatpush3.bf16.msra.mxu0 %v612_v18 }
 0x464   :  { %941 = vmatprep.subr.bf16.mxu0 %v1073_v0 }
 0x467   :  { %942 = vmatpush3.bf16.msra.mxu0 %v613_v21 }
 0x468   :  { %943 = vmatprep.subr.bf16.mxu0 %v1073_v0 }
 0x46b   :  { %944 = vmatpush3.bf16.msra.mxu0 %v614_v24 }
 0x46c   :  { %945 = vmatprep.subr.bf16.mxu0 %v1073_v0 }
 0x46f   :  { %946 = vmatpush3.bf16.msra.mxu0 %v615_v27 }
 0x470   :  { %947 = vmatprep.subr.bf16.mxu0 %v1073_v0 }
 0x473   :  { %948 = vmatpush3.bf16.msra.mxu0 %v616_v30 }
 0x474   :  { %949 = vmatprep.subr.bf16.mxu0 %v1073_v0 }
 0x477   :  { %950 = vmatpush3.bf16.msra.mxu0 %v617_v33 }
 0x478   :  { %951 = vmatprep.subr.bf16.mxu0 %v1073_v0 }
 0x47b   :  { %952 = vmatpush3.bf16.msra.mxu0 %v618_v36 }
 0x47e   :  { %954 = vmatmul.mubr.bf16.vlgmr.msra.gmra.mrb[12].mxu0 %v461_v14 }
 0x531   :  { %v496_v62 = vpop.f32.mrb[8].mxu0 }
 0x532   :  { %v497_v63 = vadd.f32 %v496_v62, %v460_v61  ;;  %v915_v1 = vpop.f32.mrb[9].mxu0  ;;  %v692_v62 = vld [vmem:[#allocation2 + $0x1f0] sm:$0xff] }
 0x533   :  { %v499_v2 = vpop.f32.mrb[10].mxu0 }
 0x534   :  { %v504_v3 = vrot.slane %v497_v63, 4  ;;  %v916_v4 = vpop.f32.mrb[11].mxu0 }
 0x535   :  { %v695_v4 = vld [vmem:[#allocation2 + $0x2c8] sm:$0xff] }
 0x536   :  { %v505_v5 = vadd.f32 %v504_v3, %v497_v63  ;;  %v694_v3 = vld [vmem:[#allocation2 + $0x280] sm:$0xff] }
 0x538   :  { %v506_v6 = vrot.slane %v505_v5, 2 }
 0x53a   :  { %v507_v7 = vadd.f32 %v506_v6, %v505_v5  ;;  %v706_v5 = vpack.c.bf16 %v695_v4, %v694_v3  ;;  %v696_v6 = vld [vmem:[#allocation2 + $0x310] sm:$0xff] }
 0x53c   :  { %v508_v8 = vrot.slane %v507_v7, 1 }
 0x53e   :  { %v509_v9 = vadd.f32 %v508_v8, %v507_v7  ;;  %v697_v7 = vld [vmem:[#allocation2 + $0x358] sm:$0xff] }
 0x53f   :  { %v707_v8 = vpack.c.bf16 %v697_v7, %v696_v6 }
 0x540   :  { %v510_v10 = vmul.f32 0.125, %v509_v9  ;;  %v698_v9 = vld [vmem:[#allocation2 + $0x3a0] sm:$0xff] }
 0x542   :  { %v511_v11 = vsub.f32 %v497_v63, %v510_v10  ;;  %v693_v63 = vld [vmem:[#allocation2 + $0x238] sm:$0xff]  ;;  %v699_v10 = vld [vmem:[#allocation2 + $0x3e8] sm:$0xff] }
 0x543   :  { %v705_v2 = vpack.c.bf16 %v693_v63, %v692_v62 }
 0x544   :  { %v512_v12 = vmul.f32 %v511_v11, %v511_v11 }
 0x546   :  { %v513_v13 = vrot.slane %v512_v12, 4 }
 0x548   :  { %v514_v14 = vadd.f32 %v513_v13, %v512_v12  ;;  %v660_v12 = vld [vmem:[#allocation5 + $0x80] ss:$0 sm:$0xff] }
 0x54a   :  { %v515_v16 = vrot.slane %v514_v14, 2 }
 0x54c   :  { %v516_v17 = vadd.f32 %v515_v16, %v514_v14  ;;  %v708_v14 = vpack.c.bf16 %v699_v10, %v698_v9  ;;  %v661_v16 = vld [vmem:[#allocation5 + $0xc8] ss:$0 sm:$0xff] }
 0x54e   :  { %v517_v18 = vrot.slane %v516_v17, 1 }
 0x550   :  { %v518_v20 = vadd.f32 %v517_v18, %v516_v17  ;;  %v700_v17 = vld [vmem:[#allocation2 + $0x430] sm:$0xff]  ;;  %v701_v18 = vld [vmem:[#allocation2 + $0x478] sm:$0xff] }
 0x551   :  { %v654_v21 = vpop.f32.mrb[12].mxu0 }
 0x552   :  { %v519_v22 = vmul.f32 0.125, %v518_v20  ;;  %v655_v23 = vadd.f32 %v654_v21, %v619_v19  ;;  %v955_v24 = vpop.f32.mrb[13].mxu0  ;;  %v709_v21 = vpack.c.bf16 %v701_v18, %v700_v17 }
 0x553   :  { %v657_v25 = vpop.f32.mrb[14].mxu0 }
 0x554   :  { %v520_v26 = vadd.f32 1e-05, %v519_v22  ;;  %v662_v27 = vrot.slane %v655_v23, 4  ;;  %v956_v28 = vpop.f32.mrb[15].mxu0  ;;  %v552_v25 = vld [vmem:[#allocation5 + $0x30] ss:$0 sm:$0xff] }
 0x556   :  { %993 = vrsqrt.f32 %v520_v26  ;;  %v663_v29 = vadd.f32 %v662_v27, %v655_v23 }
 0x558   :  { %v664_v30 = vrot.slane %v663_v29, 2 }
 0x55a   :  { %v665_v31 = vadd.f32 %v664_v30, %v663_v29 }
 0x55c   :  { %v666_v32 = vrot.slane %v665_v31, 1 }
 0x55e   :  { %v667_v33 = vadd.f32 %v666_v32, %v665_v31 }
 0x560   :  { %v994_v34 = vpop.eup %993  ;;  %v668_v36 = vmul.f32 0.125, %v667_v33 }
 0x561   :  { %v522_v37 = vmul.f32 %v994_v34, %v511_v11 }
 0x562   :  { %v669_v39 = vsub.f32 %v655_v23, %v668_v36 }
 0x563   :  { %v523_v40 = vmul.f32 %v522_v37, %v502_v35 }
 0x564   :  { %v670_v41 = vmul.f32 %v669_v39, %v669_v39 }
 0x565   :  { %v524_v42 = vadd.f32 %v523_v40, %v503_v38 }
 0x566   :  { %v671_v43 = vrot.slane %v670_v41, 4 }
 0x567   :  { %vm525_vm4 = vcmp.gt.f32.partialorder %v524_v42, 0.0  ;;  %v526_v46 = vmul.f32 0.2, %v524_v42 }
 0x568   :  { %v672_v47 = vadd.f32 %v671_v43, %v670_v41 }
 0x569   :  { %v527_v48 = vsel %vm525_vm4, %v524_v42, %v526_v46 }
 0x56a   :  { %v673_v50 = vrot.slane %v672_v47, 2  ;;  %v553_v51 = vpack.c.bf16 %v527_v48, %v527_v48 }
 0x56c   :  { %v674_v54 = vadd.f32 %v673_v50, %v672_v47  ;;  %934 = vmatmul.mubr.bf16.vlgmr.msra.gmra.mrb[8].mxu1 %v553_v51 }
 0x56d   :  { %958 = vmatpush3.bf16.msra.mxu1 %v702_v49  ;;  %973 = vmatprep.mubr.msk.bf16.mxu1 %vm1074_vm0, %v1073_v0 }
 0x56e   :  { %v675_v56 = vrot.slane %v674_v54, 1  ;;  %959 = vmatprep.subr.bf16.mxu1 %v1073_v0 }
 0x570   :  { %v676_v59 = vadd.f32 %v675_v56, %v674_v54 }
 0x571   :  { %960 = vmatpush3.bf16.msra.mxu1 %v703_v55 }
 0x572   :  { %v677_v61 = vmul.f32 0.125, %v676_v59  ;;  %961 = vmatprep.subr.bf16.mxu1 %v1073_v0 }
 0x574   :  { %v678_v1 = vadd.f32 1e-05, %v677_v61 }
 0x575   :  { %962 = vmatpush3.bf16.msra.mxu1 %v704_v60 }
 0x576   :  { %995 = vrsqrt.f32 %v678_v1  ;;  %963 = vmatprep.subr.bf16.mxu1 %v1073_v0 }
 0x579   :  { %964 = vmatpush3.bf16.msra.mxu1 %v705_v2 }
 0x57a   :  { %965 = vmatprep.subr.bf16.mxu1 %v1073_v0 }
 0x57d   :  { %966 = vmatpush3.bf16.msra.mxu1 %v706_v5 }
 0x57e   :  { %967 = vmatprep.subr.bf16.mxu1 %v1073_v0 }
 0x580   :  { %v996_v11 = vpop.eup %995 }
 0x581   :  { %v680_v13 = vmul.f32 %v996_v11, %v669_v39  ;;  %968 = vmatpush3.bf16.msra.mxu1 %v707_v8 }
 0x582   :  { %969 = vmatprep.subr.bf16.mxu1 %v1073_v0 }
 0x583   :  { %v681_v19 = vmul.f32 %v680_v13, %v660_v12 }
 0x585   :  { %v682_v20 = vadd.f32 %v681_v19, %v661_v16  ;;  %970 = vmatpush3.bf16.msra.mxu1 %v708_v14 }
 0x586   :  { %971 = vmatprep.subr.bf16.mxu1 %v1073_v0 }
 0x587   :  { %vm683_vm5 = vcmp.gt.f32.partialorder %v682_v20, 0.0  ;;  %v684_v22 = vmul.f32 0.2, %v682_v20 }
 0x589   :  { %972 = vmatpush3.bf16.msra.mxu1 %v709_v21  ;;  %v685_v23 = vsel %vm683_vm5, %v682_v20, %v684_v22 }
 0x58a   :  { %v711_v24 = vpack.c.bf16 %v685_v23, %v685_v23 }
 0x58c   :  { %974 = vmatmul.mubr.bf16.vlgmr.msra.gmra.mrb[12].mxu1 %v711_v24 }
 0x63f   :  { %v588_v26 = vpop.f32.mrb[8].mxu1 }
 0x640   :  { %v589_v27 = vadd.f32 %v588_v26, %v552_v25  ;;  %v935_v28 = vpop.f32.mrb[9].mxu1 }
 0x641   :  { %v591_v29 = vpop.f32.mrb[10].mxu1 }
 0x642   :  { %594 = vst [vmem:[#allocation7] sm:$0xff] %v589_v27  ;;  %v936_v30 = vpop.f32.mrb[11].mxu1 }
 0x643   :  { %1052 = shalt.err (!%p1049_p6)
}
 0x644   :  { %s1053_s24 = scalar_lea.hbm %s1230_s4, 128 }
 0x645   :  { %p1054_p7 = scmp.ne.s32.totalorder %s1230_s4, %s1053_s24  ;;  %p1057_p8 = scmp.lt.u32.totalorder %s1053_s24, %s1230_s4 }
 0x647   :  { %p1059_p9 = pnand %p1057_p8, %p1054_p7 }
 0x649   :  { %1062 = shalt.err (!%p1059_p9)
}
 0x64a   :  { %763 = dma.vmem_to_hbm [thread:$0]  %s761_s20, 128, %s1230_s4, [#allocation4]   ;;  %v710_v0 = vld [vmem:[#allocation5 + $0x40] ss:$0 sm:$0xff] }
 0x65f   :  { %v746_v31 = vpop.f32.mrb[12].mxu1 }
 0x660   :  { %v747_v32 = vadd.f32 %v746_v31, %v710_v0  ;;  %v975_v33 = vpop.f32.mrb[13].mxu1 }
 0x661   :  { %v749_v34 = vpop.f32.mrb[14].mxu1 }
 0x662   :  { %v752_v35 = vadd.f32 %v747_v32, %v1171_v15  ;;  %v976_v36 = vpop.f32.mrb[15].mxu1 }
 0x664   :  { %753 = vst [vmem:[%s1231_s5] sm:$0xff] %v752_v35 }
 0x665   :  { %1067 = dma.done.wait [#allocation4], 128  }
 0x666   :  { %1068 = vsyncadd [#allocation4], 4294967168 }
 0x667   :  { %771 = vsyncpa [#allocation3], 1 }
 0x668   :  { %772 = vsyncpa [#allocation6], 1 }
 0x669   :  { %773 = vsyncpa [#allocation4], 1 }

</bundles_post_ra>
